<compile_context>
chip_gen: v7x
topology: tpu7x:2x2x1
jax: 0.10.0
libtpu: 0.0.40
codegen_flags: <defaults>
</compile_context>

<pallas_src>
import functools

import jax
import jax.numpy as jnp
from jax.experimental import pallas as pl
from jax.experimental.pallas import tpu as pltpu


_UNROLL = 8          # DMA descriptors issued per rolled loop iteration
_NUM_PHASES = 2      # per-tile DMA phases (issue all, drain/consume per phase)


def _round_up(x, m):
    return (x + m - 1) // m * m


def _gather_kernel(idx_smem, w_hbm, valid_ref, out_ref, gbuf, dma_sem, *,
                   tokens_per_tile, num_phases):
    """Gather `tokens_per_tile` embedding rows from the HBM table via async DMAs."""
    base = pl.program_id(0) * tokens_per_tile
    phase_rows = tokens_per_tile // num_phases          # static, multiple of 8

    # ---- issue: one row-copy DMA per token; 8 descriptors per rolled iter ----
    # ids were clamped in the wrapper, so every DMA source is in-bounds.
    # TODO(synk): padded tokens of the last tile still issue (harmless) DMAs;
    # a per-descriptor pl.when guard would add scalar work to the hot loop.
    def issue_phase(p):
        start = p * phase_rows

        @pl.loop(0, phase_rows // _UNROLL)
        def _(c):
            r0 = pl.multiple_of(start + c * _UNROLL, _UNROLL)
            for u in range(_UNROLL):                     # manual 8x unroll
                r = r0 + u
                row = idx_smem[base + r]                 # pre-clamped id
                pltpu.make_async_copy(
                    w_hbm.at[pl.ds(row, 1)],
                    gbuf.at[pl.ds(r, 1)],
                    dma_sem.at[p],
                ).start()

    for p in range(num_phases):
        issue_phase(p)

    # ---- drain + consume per phase ----
    # One aggregate wait per phase: the dummy descriptor's byte count equals the
    # sum of that phase's row copies on the shared semaphore (DMA semaphores
    # count bytes), replacing phase_rows individual waits.
    valid = valid_ref[...]                               # (tT, 1) 1.0/0.0
    for p in range(num_phases):
        lo, hi = p * phase_rows, (p + 1) * phase_rows
        pltpu.make_async_copy(gbuf.at[lo:hi], gbuf.at[lo:hi], dma_sem.at[p]).wait()
        out_ref[lo:hi, :] = (gbuf[lo:hi, :] * valid[lo:hi, :]).astype(out_ref.dtype)


def serialized_embedding(indices, weight, serialization_factor, *, tile_tokens=1024):
    """Pallas implementation of SerializedEmbedding.forward.

    indices: (B, S) int32
    weight : (V, H) float, V % serialization_factor == 0 (full vstacked table)
    returns: (B, S, H) same dtype as weight
    """
    B, S = indices.shape
    V, H = weight.shape
    assert V % serialization_factor == 0   # parity with the torch module
    # The serialization loop only shrinks the *gradient* working set in the torch
    # module; the forward collapses to a single masked gather from the full table.

    dtype = weight.dtype
    itemsize = jnp.dtype(dtype).itemsize

    T = B * S
    idx = indices.reshape(T).astype(jnp.int32)

    # Hoisted out of the kernel's hot issue loop:
    #   - clamp ids so every DMA source is in-bounds,
    #   - float validity column so masking is one multiply.
    safe_idx = jnp.clip(idx, 0, V - 1)
    valid = jnp.logical_and(idx >= 0, idx < V).astype(dtype).reshape(T, 1)

    # Lane-dense output: pad hidden dim to a multiple of 128 (no-op for BERT's 768).
    H_pad = _round_up(H, 128)
    w = weight if H_pad == H else jnp.pad(weight, ((0, 0), (0, H_pad - H)))

    # Token tiling: cap the tile so there are >=2 grid tiles whenever possible
    # (the "parallel" axis splits across both TensorCores on v7x), tiles are
    # multiples of 16 so each splits into two sublane-aligned DMA phases, and
    # tile_tokens<=1024 keeps resident VMEM ~12 MiB (safe on v7x's 64 MiB).
    tT = min(_round_up(tile_tokens, 16), max(16, _round_up((T + 1) // 2, 16)))
    T_pad = _round_up(T, tT)
    if T_pad != T:
        safe_idx = jnp.pad(safe_idx, (0, T_pad - T))     # padded rows sliced off below
        valid = jnp.pad(valid, ((0, T_pad - T), (0, 0)))
    n_tiles = T_pad // tT

    kernel = functools.partial(
        _gather_kernel, tokens_per_tile=tT, num_phases=_NUM_PHASES)

    # VMEM: out block (double-buffered by the pipeline) + gather buffer + validity
    # column blocks.  Set the scoped limit explicitly (v5e default is only 16 MiB).
    need = (2 * tT * H_pad + tT * H_pad + 2 * tT * 128) * itemsize
    vmem_limit = int(min(60 * 2**20, max(24 * 2**20, 2 * need)))

    bytes_accessed = 2 * T_pad * H_pad * itemsize + T_pad * 4 + T_pad * itemsize

    out = pl.pallas_call(
        kernel,
        out_shape=jax.ShapeDtypeStruct((T_pad, H_pad), dtype),
        grid_spec=pltpu.PrefetchScalarGridSpec(
            num_scalar_prefetch=1,            # clamped ids -> SMEM for DMA addressing
            grid=(n_tiles,),
            in_specs=[
                pl.BlockSpec(memory_space=pl.ANY),                  # table stays in HBM
                pl.BlockSpec((tT, 1), lambda t, idx_ref: (t, 0)),   # validity column
            ],
            out_specs=pl.BlockSpec((tT, H_pad), lambda t, idx_ref: (t, 0)),
            scratch_shapes=[
                pltpu.VMEM((tT, H_pad), dtype),          # gather landing buffer
                pltpu.SemaphoreType.DMA((_NUM_PHASES,)),  # one DMA sem per phase
            ],
        ),
        compiler_params=pltpu.CompilerParams(
            dimension_semantics=("parallel",),            # tiles are independent
            vmem_limit_bytes=vmem_limit,
        ),
        cost_estimate=pl.CostEstimate(
            flops=T_pad * H_pad,
            transcendentals=0,
            bytes_accessed=bytes_accessed,
        ),
    )(safe_idx, w, valid)

    return out[:T, :H].reshape(B, S, H)


if __name__ == "__main__":
    key = jax.random.PRNGKey(0)
    k_w, k_i = jax.random.split(key)

    # Small synthetic config consistent with the module.
    num_embeddings = 64
    hidden = 32
    serialization_factor = 4
    batch, seq = 2, 8

    weight = jax.random.normal(k_w, (num_embeddings, hidden), dtype=jnp.float32)
    indices = jax.random.randint(k_i, (batch, seq), 0, num_embeddings, dtype=jnp.int32)

    out = serialized_embedding(indices, weight, serialization_factor)
    out = jax.block_until_ready(out)

    # Reference: a serialized embedding lookup is exactly a plain embedding lookup.
    ref = weight[indices]
    assert out.shape == (batch, seq, hidden)
    assert jnp.allclose(out, ref, atol=1e-6), "mismatch vs reference embedding lookup"

    # The module zeroes rows whose id falls outside every slice; check parity.
    indices_oob = indices.at[0, 0].set(num_embeddings + 3)
    out_oob = jax.block_until_ready(
        serialized_embedding(indices_oob, weight, serialization_factor))
    assert jnp.allclose(out_oob[0, 0], 0.0)
    assert jnp.allclose(out_oob[0, 1:], ref[0, 1:], atol=1e-6)

    print("KERNEL_OK")
</pallas_src>

<mosaic_0001>
module attributes {stable_mosaic.version = 11 : i64} {
  func.func @_gather_kernel(%arg0: i32, %arg1: memref<16xi32, #tpu.memory_space<smem>>, %arg2: memref<64x128xf32, #tpu.memory_space<any>>, %arg3: memref<16x1xf32, #tpu.memory_space<vmem>>, %arg4: memref<16x128xf32, #tpu.memory_space<vmem>>, %arg5: memref<16x128xf32, #tpu.memory_space<vmem>>, %arg6: memref<2x!tpu.dma_semaphore, #tpu.memory_space<semaphore_mem>>) attributes {dimension_semantics = [#tpu.dimension_semantics<parallel>], iteration_bounds = array<i64: 1>, scalar_prefetch = 1 : i64, scratch_operands = 2 : i64, tpu.core_type = #tpu.core_type<tc>, window_params = [{}, {transform_indices = @transform_1, window_bounds = array<i64: 16, 1>}, {transform_indices = @transform_2, window_bounds = array<i64: 16, 128>}]} {
    %c16_i32 = arith.constant 16 : i32
    %0 = arith.muli %arg0, %c16_i32 : i32
    %c0_i32 = arith.constant 0 : i32
    %c1_i32 = arith.constant 1 : i32
    %1 = arith.muli %c0_i32, %c1_i32 : i32
    %c0_i32_0 = arith.constant 0 : i32
    %2 = arith.addi %c0_i32_0, %1 : i32
    %c8_i32 = arith.constant 8 : i32
    %3 = arith.muli %2, %c8_i32 : i32
    %c0_i32_1 = arith.constant 0 : i32
    %4 = arith.addi %c0_i32_1, %3 : i32
    %5 = tpu.assume_multiple %4, 8 : i32
    %c0_i32_2 = arith.constant 0 : i32
    %6 = arith.addi %5, %c0_i32_2 : i32
    %7 = arith.addi %0, %6 : i32
    %8 = arith.index_cast %7 : i32 to index
    %9 = memref.load %arg1[%8] : memref<16xi32, #tpu.memory_space<smem>>
    %c0_i32_3 = arith.constant 0 : i32
    %c0_i32_4 = arith.constant 0 : i32
    %10 = tpu.memref_slice %arg2[%9, %c0_i32_4] : memref<64x128xf32, #tpu.memory_space<any>> -> memref<1x128xf32, #tpu.memory_space<any>>
    %c0_i32_5 = arith.constant 0 : i32
    %11 = tpu.memref_slice %arg5[%6, %c0_i32_5] : memref<16x128xf32, #tpu.memory_space<vmem>> -> memref<1x128xf32, #tpu.memory_space<vmem>>
    %12 = tpu.memref_slice %arg6[%c0_i32_3] : memref<2x!tpu.dma_semaphore, #tpu.memory_space<semaphore_mem>> -> memref<1x!tpu.dma_semaphore, #tpu.memory_space<semaphore_mem>>
    %13 = tpu.memref_squeeze %12 : memref<1x!tpu.dma_semaphore, #tpu.memory_space<semaphore_mem>> -> memref<!tpu.dma_semaphore, #tpu.memory_space<semaphore_mem>>
    tpu.enqueue_dma source(%10 : memref<1x128xf32, #tpu.memory_space<any>>) target(%11 : memref<1x128xf32, #tpu.memory_space<vmem>>) target_semaphore(%13 : memref<!tpu.dma_semaphore, #tpu.memory_space<semaphore_mem>>)
    %c1_i32_6 = arith.constant 1 : i32
    %14 = arith.addi %5, %c1_i32_6 : i32
    %15 = arith.addi %0, %14 : i32
    %16 = arith.index_cast %15 : i32 to index
    %17 = memref.load %arg1[%16] : memref<16xi32, #tpu.memory_space<smem>>
    %c0_i32_7 = arith.constant 0 : i32
    %c0_i32_8 = arith.constant 0 : i32
    %18 = tpu.memref_slice %arg2[%17, %c0_i32_8] : memref<64x128xf32, #tpu.memory_space<any>> -> memref<1x128xf32, #tpu.memory_space<any>>
    %c0_i32_9 = arith.constant 0 : i32
    %19 = tpu.memref_slice %arg5[%14, %c0_i32_9] : memref<16x128xf32, #tpu.memory_space<vmem>> -> memref<1x128xf32, #tpu.memory_space<vmem>>
    %20 = tpu.memref_slice %arg6[%c0_i32_7] : memref<2x!tpu.dma_semaphore, #tpu.memory_space<semaphore_mem>> -> memref<1x!tpu.dma_semaphore, #tpu.memory_space<semaphore_mem>>
    %21 = tpu.memref_squeeze %20 : memref<1x!tpu.dma_semaphore, #tpu.memory_space<semaphore_mem>> -> memref<!tpu.dma_semaphore, #tpu.memory_space<semaphore_mem>>
    tpu.enqueue_dma source(%18 : memref<1x128xf32, #tpu.memory_space<any>>) target(%19 : memref<1x128xf32, #tpu.memory_space<vmem>>) target_semaphore(%21 : memref<!tpu.dma_semaphore, #tpu.memory_space<semaphore_mem>>)
    %c2_i32 = arith.constant 2 : i32
    %22 = arith.addi %5, %c2_i32 : i32
    %23 = arith.addi %0, %22 : i32
    %24 = arith.index_cast %23 : i32 to index
    %25 = memref.load %arg1[%24] : memref<16xi32, #tpu.memory_space<smem>>
    %c0_i32_10 = arith.constant 0 : i32
    %c0_i32_11 = arith.constant 0 : i32
    %26 = tpu.memref_slice %arg2[%25, %c0_i32_11] : memref<64x128xf32, #tpu.memory_space<any>> -> memref<1x128xf32, #tpu.memory_space<any>>
    %c0_i32_12 = arith.constant 0 : i32
    %27 = tpu.memref_slice %arg5[%22, %c0_i32_12] : memref<16x128xf32, #tpu.memory_space<vmem>> -> memref<1x128xf32, #tpu.memory_space<vmem>>
    %28 = tpu.memref_slice %arg6[%c0_i32_10] : memref<2x!tpu.dma_semaphore, #tpu.memory_space<semaphore_mem>> -> memref<1x!tpu.dma_semaphore, #tpu.memory_space<semaphore_mem>>
    %29 = tpu.memref_squeeze %28 : memref<1x!tpu.dma_semaphore, #tpu.memory_space<semaphore_mem>> -> memref<!tpu.dma_semaphore, #tpu.memory_space<semaphore_mem>>
    tpu.enqueue_dma source(%26 : memref<1x128xf32, #tpu.memory_space<any>>) target(%27 : memref<1x128xf32, #tpu.memory_space<vmem>>) target_semaphore(%29 : memref<!tpu.dma_semaphore, #tpu.memory_space<semaphore_mem>>)
    %c3_i32 = arith.constant 3 : i32
    %30 = arith.addi %5, %c3_i32 : i32
    %31 = arith.addi %0, %30 : i32
    %32 = arith.index_cast %31 : i32 to index
    %33 = memref.load %arg1[%32] : memref<16xi32, #tpu.memory_space<smem>>
    %c0_i32_13 = arith.constant 0 : i32
    %c0_i32_14 = arith.constant 0 : i32
    %34 = tpu.memref_slice %arg2[%33, %c0_i32_14] : memref<64x128xf32, #tpu.memory_space<any>> -> memref<1x128xf32, #tpu.memory_space<any>>
    %c0_i32_15 = arith.constant 0 : i32
    %35 = tpu.memref_slice %arg5[%30, %c0_i32_15] : memref<16x128xf32, #tpu.memory_space<vmem>> -> memref<1x128xf32, #tpu.memory_space<vmem>>
    %36 = tpu.memref_slice %arg6[%c0_i32_13] : memref<2x!tpu.dma_semaphore, #tpu.memory_space<semaphore_mem>> -> memref<1x!tpu.dma_semaphore, #tpu.memory_space<semaphore_mem>>
    %37 = tpu.memref_squeeze %36 : memref<1x!tpu.dma_semaphore, #tpu.memory_space<semaphore_mem>> -> memref<!tpu.dma_semaphore, #tpu.memory_space<semaphore_mem>>
    tpu.enqueue_dma source(%34 : memref<1x128xf32, #tpu.memory_space<any>>) target(%35 : memref<1x128xf32, #tpu.memory_space<vmem>>) target_semaphore(%37 : memref<!tpu.dma_semaphore, #tpu.memory_space<semaphore_mem>>)
    %c4_i32 = arith.constant 4 : i32
    %38 = arith.addi %5, %c4_i32 : i32
    %39 = arith.addi %0, %38 : i32
    %40 = arith.index_cast %39 : i32 to index
    %41 = memref.load %arg1[%40] : memref<16xi32, #tpu.memory_space<smem>>
    %c0_i32_16 = arith.constant 0 : i32
    %c0_i32_17 = arith.constant 0 : i32
    %42 = tpu.memref_slice %arg2[%41, %c0_i32_17] : memref<64x128xf32, #tpu.memory_space<any>> -> memref<1x128xf32, #tpu.memory_space<any>>
    %c0_i32_18 = arith.constant 0 : i32
    %43 = tpu.memref_slice %arg5[%38, %c0_i32_18] : memref<16x128xf32, #tpu.memory_space<vmem>> -> memref<1x128xf32, #tpu.memory_space<vmem>>
    %44 = tpu.memref_slice %arg6[%c0_i32_16] : memref<2x!tpu.dma_semaphore, #tpu.memory_space<semaphore_mem>> -> memref<1x!tpu.dma_semaphore, #tpu.memory_space<semaphore_mem>>
    %45 = tpu.memref_squeeze %44 : memref<1x!tpu.dma_semaphore, #tpu.memory_space<semaphore_mem>> -> memref<!tpu.dma_semaphore, #tpu.memory_space<semaphore_mem>>
    tpu.enqueue_dma source(%42 : memref<1x128xf32, #tpu.memory_space<any>>) target(%43 : memref<1x128xf32, #tpu.memory_space<vmem>>) target_semaphore(%45 : memref<!tpu.dma_semaphore, #tpu.memory_space<semaphore_mem>>)
    %c5_i32 = arith.constant 5 : i32
    %46 = arith.addi %5, %c5_i32 : i32
    %47 = arith.addi %0, %46 : i32
    %48 = arith.index_cast %47 : i32 to index
    %49 = memref.load %arg1[%48] : memref<16xi32, #tpu.memory_space<smem>>
    %c0_i32_19 = arith.constant 0 : i32
    %c0_i32_20 = arith.constant 0 : i32
    %50 = tpu.memref_slice %arg2[%49, %c0_i32_20] : memref<64x128xf32, #tpu.memory_space<any>> -> memref<1x128xf32, #tpu.memory_space<any>>
    %c0_i32_21 = arith.constant 0 : i32
    %51 = tpu.memref_slice %arg5[%46, %c0_i32_21] : memref<16x128xf32, #tpu.memory_space<vmem>> -> memref<1x128xf32, #tpu.memory_space<vmem>>
    %52 = tpu.memref_slice %arg6[%c0_i32_19] : memref<2x!tpu.dma_semaphore, #tpu.memory_space<semaphore_mem>> -> memref<1x!tpu.dma_semaphore, #tpu.memory_space<semaphore_mem>>
    %53 = tpu.memref_squeeze %52 : memref<1x!tpu.dma_semaphore, #tpu.memory_space<semaphore_mem>> -> memref<!tpu.dma_semaphore, #tpu.memory_space<semaphore_mem>>
    tpu.enqueue_dma source(%50 : memref<1x128xf32, #tpu.memory_space<any>>) target(%51 : memref<1x128xf32, #tpu.memory_space<vmem>>) target_semaphore(%53 : memref<!tpu.dma_semaphore, #tpu.memory_space<semaphore_mem>>)
    %c6_i32 = arith.constant 6 : i32
    %54 = arith.addi %5, %c6_i32 : i32
    %55 = arith.addi %0, %54 : i32
    %56 = arith.index_cast %55 : i32 to index
    %57 = memref.load %arg1[%56] : memref<16xi32, #tpu.memory_space<smem>>
    %c0_i32_22 = arith.constant 0 : i32
    %c0_i32_23 = arith.constant 0 : i32
    %58 = tpu.memref_slice %arg2[%57, %c0_i32_23] : memref<64x128xf32, #tpu.memory_space<any>> -> memref<1x128xf32, #tpu.memory_space<any>>
    %c0_i32_24 = arith.constant 0 : i32
    %59 = tpu.memref_slice %arg5[%54, %c0_i32_24] : memref<16x128xf32, #tpu.memory_space<vmem>> -> memref<1x128xf32, #tpu.memory_space<vmem>>
    %60 = tpu.memref_slice %arg6[%c0_i32_22] : memref<2x!tpu.dma_semaphore, #tpu.memory_space<semaphore_mem>> -> memref<1x!tpu.dma_semaphore, #tpu.memory_space<semaphore_mem>>
    %61 = tpu.memref_squeeze %60 : memref<1x!tpu.dma_semaphore, #tpu.memory_space<semaphore_mem>> -> memref<!tpu.dma_semaphore, #tpu.memory_space<semaphore_mem>>
    tpu.enqueue_dma source(%58 : memref<1x128xf32, #tpu.memory_space<any>>) target(%59 : memref<1x128xf32, #tpu.memory_space<vmem>>) target_semaphore(%61 : memref<!tpu.dma_semaphore, #tpu.memory_space<semaphore_mem>>)
    %c7_i32 = arith.constant 7 : i32
    %62 = arith.addi %5, %c7_i32 : i32
    %63 = arith.addi %0, %62 : i32
    %64 = arith.index_cast %63 : i32 to index
    %65 = memref.load %arg1[%64] : memref<16xi32, #tpu.memory_space<smem>>
    %c0_i32_25 = arith.constant 0 : i32
    %c0_i32_26 = arith.constant 0 : i32
    %66 = tpu.memref_slice %arg2[%65, %c0_i32_26] : memref<64x128xf32, #tpu.memory_space<any>> -> memref<1x128xf32, #tpu.memory_space<any>>
    %c0_i32_27 = arith.constant 0 : i32
    %67 = tpu.memref_slice %arg5[%62, %c0_i32_27] : memref<16x128xf32, #tpu.memory_space<vmem>> -> memref<1x128xf32, #tpu.memory_space<vmem>>
    %68 = tpu.memref_slice %arg6[%c0_i32_25] : memref<2x!tpu.dma_semaphore, #tpu.memory_space<semaphore_mem>> -> memref<1x!tpu.dma_semaphore, #tpu.memory_space<semaphore_mem>>
    %69 = tpu.memref_squeeze %68 : memref<1x!tpu.dma_semaphore, #tpu.memory_space<semaphore_mem>> -> memref<!tpu.dma_semaphore, #tpu.memory_space<semaphore_mem>>
    tpu.enqueue_dma source(%66 : memref<1x128xf32, #tpu.memory_space<any>>) target(%67 : memref<1x128xf32, #tpu.memory_space<vmem>>) target_semaphore(%69 : memref<!tpu.dma_semaphore, #tpu.memory_space<semaphore_mem>>)
    %c1_i32_28 = arith.constant 1 : i32
    %c0_i32_29 = arith.constant 0 : i32
    %c1_i32_30 = arith.constant 1 : i32
    %70 = arith.muli %c0_i32_29, %c1_i32_30 : i32
    %c0_i32_31 = arith.constant 0 : i32
    %71 = arith.addi %c0_i32_31, %70 : i32
    %c8_i32_32 = arith.constant 8 : i32
    %72 = arith.muli %71, %c8_i32_32 : i32
    %c8_i32_33 = arith.constant 8 : i32
    %73 = arith.addi %c8_i32_33, %72 : i32
    %74 = tpu.assume_multiple %73, 8 : i32
    %c0_i32_34 = arith.constant 0 : i32
    %75 = arith.addi %74, %c0_i32_34 : i32
    %76 = arith.addi %0, %75 : i32
    %77 = arith.index_cast %76 : i32 to index
    %78 = memref.load %arg1[%77] : memref<16xi32, #tpu.memory_space<smem>>
    %c1_i32_35 = arith.constant 1 : i32
    %c0_i32_36 = arith.constant 0 : i32
    %79 = tpu.memref_slice %arg2[%78, %c0_i32_36] : memref<64x128xf32, #tpu.memory_space<any>> -> memref<1x128xf32, #tpu.memory_space<any>>
    %c0_i32_37 = arith.constant 0 : i32
    %80 = tpu.memref_slice %arg5[%75, %c0_i32_37] : memref<16x128xf32, #tpu.memory_space<vmem>> -> memref<1x128xf32, #tpu.memory_space<vmem>>
    %81 = tpu.memref_slice %arg6[%c1_i32_35] : memref<2x!tpu.dma_semaphore, #tpu.memory_space<semaphore_mem>> -> memref<1x!tpu.dma_semaphore, #tpu.memory_space<semaphore_mem>>
    %82 = tpu.memref_squeeze %81 : memref<1x!tpu.dma_semaphore, #tpu.memory_space<semaphore_mem>> -> memref<!tpu.dma_semaphore, #tpu.memory_space<semaphore_mem>>
    tpu.enqueue_dma source(%79 : memref<1x128xf32, #tpu.memory_space<any>>) target(%80 : memref<1x128xf32, #tpu.memory_space<vmem>>) target_semaphore(%82 : memref<!tpu.dma_semaphore, #tpu.memory_space<semaphore_mem>>)
    %c1_i32_38 = arith.constant 1 : i32
    %83 = arith.addi %74, %c1_i32_38 : i32
    %84 = arith.addi %0, %83 : i32
    %85 = arith.index_cast %84 : i32 to index
    %86 = memref.load %arg1[%85] : memref<16xi32, #tpu.memory_space<smem>>
    %c1_i32_39 = arith.constant 1 : i32
    %c0_i32_40 = arith.constant 0 : i32
    %87 = tpu.memref_slice %arg2[%86, %c0_i32_40] : memref<64x128xf32, #tpu.memory_space<any>> -> memref<1x128xf32, #tpu.memory_space<any>>
    %c0_i32_41 = arith.constant 0 : i32
    %88 = tpu.memref_slice %arg5[%83, %c0_i32_41] : memref<16x128xf32, #tpu.memory_space<vmem>> -> memref<1x128xf32, #tpu.memory_space<vmem>>
    %89 = tpu.memref_slice %arg6[%c1_i32_39] : memref<2x!tpu.dma_semaphore, #tpu.memory_space<semaphore_mem>> -> memref<1x!tpu.dma_semaphore, #tpu.memory_space<semaphore_mem>>
    %90 = tpu.memref_squeeze %89 : memref<1x!tpu.dma_semaphore, #tpu.memory_space<semaphore_mem>> -> memref<!tpu.dma_semaphore, #tpu.memory_space<semaphore_mem>>
    tpu.enqueue_dma source(%87 : memref<1x128xf32, #tpu.memory_space<any>>) target(%88 : memref<1x128xf32, #tpu.memory_space<vmem>>) target_semaphore(%90 : memref<!tpu.dma_semaphore, #tpu.memory_space<semaphore_mem>>)
    %c2_i32_42 = arith.constant 2 : i32
    %91 = arith.addi %74, %c2_i32_42 : i32
    %92 = arith.addi %0, %91 : i32
    %93 = arith.index_cast %92 : i32 to index
    %94 = memref.load %arg1[%93] : memref<16xi32, #tpu.memory_space<smem>>
    %c1_i32_43 = arith.constant 1 : i32
    %c0_i32_44 = arith.constant 0 : i32
    %95 = tpu.memref_slice %arg2[%94, %c0_i32_44] : memref<64x128xf32, #tpu.memory_space<any>> -> memref<1x128xf32, #tpu.memory_space<any>>
    %c0_i32_45 = arith.constant 0 : i32
    %96 = tpu.memref_slice %arg5[%91, %c0_i32_45] : memref<16x128xf32, #tpu.memory_space<vmem>> -> memref<1x128xf32, #tpu.memory_space<vmem>>
    %97 = tpu.memref_slice %arg6[%c1_i32_43] : memref<2x!tpu.dma_semaphore, #tpu.memory_space<semaphore_mem>> -> memref<1x!tpu.dma_semaphore, #tpu.memory_space<semaphore_mem>>
    %98 = tpu.memref_squeeze %97 : memref<1x!tpu.dma_semaphore, #tpu.memory_space<semaphore_mem>> -> memref<!tpu.dma_semaphore, #tpu.memory_space<semaphore_mem>>
    tpu.enqueue_dma source(%95 : memref<1x128xf32, #tpu.memory_space<any>>) target(%96 : memref<1x128xf32, #tpu.memory_space<vmem>>) target_semaphore(%98 : memref<!tpu.dma_semaphore, #tpu.memory_space<semaphore_mem>>)
    %c3_i32_46 = arith.constant 3 : i32
    %99 = arith.addi %74, %c3_i32_46 : i32
    %100 = arith.addi %0, %99 : i32
    %101 = arith.index_cast %100 : i32 to index
    %102 = memref.load %arg1[%101] : memref<16xi32, #tpu.memory_space<smem>>
    %c1_i32_47 = arith.constant 1 : i32
    %c0_i32_48 = arith.constant 0 : i32
    %103 = tpu.memref_slice %arg2[%102, %c0_i32_48] : memref<64x128xf32, #tpu.memory_space<any>> -> memref<1x128xf32, #tpu.memory_space<any>>
    %c0_i32_49 = arith.constant 0 : i32
    %104 = tpu.memref_slice %arg5[%99, %c0_i32_49] : memref<16x128xf32, #tpu.memory_space<vmem>> -> memref<1x128xf32, #tpu.memory_space<vmem>>
    %105 = tpu.memref_slice %arg6[%c1_i32_47] : memref<2x!tpu.dma_semaphore, #tpu.memory_space<semaphore_mem>> -> memref<1x!tpu.dma_semaphore, #tpu.memory_space<semaphore_mem>>
    %106 = tpu.memref_squeeze %105 : memref<1x!tpu.dma_semaphore, #tpu.memory_space<semaphore_mem>> -> memref<!tpu.dma_semaphore, #tpu.memory_space<semaphore_mem>>
    tpu.enqueue_dma source(%103 : memref<1x128xf32, #tpu.memory_space<any>>) target(%104 : memref<1x128xf32, #tpu.memory_space<vmem>>) target_semaphore(%106 : memref<!tpu.dma_semaphore, #tpu.memory_space<semaphore_mem>>)
    %c4_i32_50 = arith.constant 4 : i32
    %107 = arith.addi %74, %c4_i32_50 : i32
    %108 = arith.addi %0, %107 : i32
    %109 = arith.index_cast %108 : i32 to index
    %110 = memref.load %arg1[%109] : memref<16xi32, #tpu.memory_space<smem>>
    %c1_i32_51 = arith.constant 1 : i32
    %c0_i32_52 = arith.constant 0 : i32
    %111 = tpu.memref_slice %arg2[%110, %c0_i32_52] : memref<64x128xf32, #tpu.memory_space<any>> -> memref<1x128xf32, #tpu.memory_space<any>>
    %c0_i32_53 = arith.constant 0 : i32
    %112 = tpu.memref_slice %arg5[%107, %c0_i32_53] : memref<16x128xf32, #tpu.memory_space<vmem>> -> memref<1x128xf32, #tpu.memory_space<vmem>>
    %113 = tpu.memref_slice %arg6[%c1_i32_51] : memref<2x!tpu.dma_semaphore, #tpu.memory_space<semaphore_mem>> -> memref<1x!tpu.dma_semaphore, #tpu.memory_space<semaphore_mem>>
    %114 = tpu.memref_squeeze %113 : memref<1x!tpu.dma_semaphore, #tpu.memory_space<semaphore_mem>> -> memref<!tpu.dma_semaphore, #tpu.memory_space<semaphore_mem>>
    tpu.enqueue_dma source(%111 : memref<1x128xf32, #tpu.memory_space<any>>) target(%112 : memref<1x128xf32, #tpu.memory_space<vmem>>) target_semaphore(%114 : memref<!tpu.dma_semaphore, #tpu.memory_space<semaphore_mem>>)
    %c5_i32_54 = arith.constant 5 : i32
    %115 = arith.addi %74, %c5_i32_54 : i32
    %116 = arith.addi %0, %115 : i32
    %117 = arith.index_cast %116 : i32 to index
    %118 = memref.load %arg1[%117] : memref<16xi32, #tpu.memory_space<smem>>
    %c1_i32_55 = arith.constant 1 : i32
    %c0_i32_56 = arith.constant 0 : i32
    %119 = tpu.memref_slice %arg2[%118, %c0_i32_56] : memref<64x128xf32, #tpu.memory_space<any>> -> memref<1x128xf32, #tpu.memory_space<any>>
    %c0_i32_57 = arith.constant 0 : i32
    %120 = tpu.memref_slice %arg5[%115, %c0_i32_57] : memref<16x128xf32, #tpu.memory_space<vmem>> -> memref<1x128xf32, #tpu.memory_space<vmem>>
    %121 = tpu.memref_slice %arg6[%c1_i32_55] : memref<2x!tpu.dma_semaphore, #tpu.memory_space<semaphore_mem>> -> memref<1x!tpu.dma_semaphore, #tpu.memory_space<semaphore_mem>>
    %122 = tpu.memref_squeeze %121 : memref<1x!tpu.dma_semaphore, #tpu.memory_space<semaphore_mem>> -> memref<!tpu.dma_semaphore, #tpu.memory_space<semaphore_mem>>
    tpu.enqueue_dma source(%119 : memref<1x128xf32, #tpu.memory_space<any>>) target(%120 : memref<1x128xf32, #tpu.memory_space<vmem>>) target_semaphore(%122 : memref<!tpu.dma_semaphore, #tpu.memory_space<semaphore_mem>>)
    %c6_i32_58 = arith.constant 6 : i32
    %123 = arith.addi %74, %c6_i32_58 : i32
    %124 = arith.addi %0, %123 : i32
    %125 = arith.index_cast %124 : i32 to index
    %126 = memref.load %arg1[%125] : memref<16xi32, #tpu.memory_space<smem>>
    %c1_i32_59 = arith.constant 1 : i32
    %c0_i32_60 = arith.constant 0 : i32
    %127 = tpu.memref_slice %arg2[%126, %c0_i32_60] : memref<64x128xf32, #tpu.memory_space<any>> -> memref<1x128xf32, #tpu.memory_space<any>>
    %c0_i32_61 = arith.constant 0 : i32
    %128 = tpu.memref_slice %arg5[%123, %c0_i32_61] : memref<16x128xf32, #tpu.memory_space<vmem>> -> memref<1x128xf32, #tpu.memory_space<vmem>>
    %129 = tpu.memref_slice %arg6[%c1_i32_59] : memref<2x!tpu.dma_semaphore, #tpu.memory_space<semaphore_mem>> -> memref<1x!tpu.dma_semaphore, #tpu.memory_space<semaphore_mem>>
    %130 = tpu.memref_squeeze %129 : memref<1x!tpu.dma_semaphore, #tpu.memory_space<semaphore_mem>> -> memref<!tpu.dma_semaphore, #tpu.memory_space<semaphore_mem>>
    tpu.enqueue_dma source(%127 : memref<1x128xf32, #tpu.memory_space<any>>) target(%128 : memref<1x128xf32, #tpu.memory_space<vmem>>) target_semaphore(%130 : memref<!tpu.dma_semaphore, #tpu.memory_space<semaphore_mem>>)
    %c7_i32_62 = arith.constant 7 : i32
    %131 = arith.addi %74, %c7_i32_62 : i32
    %132 = arith.addi %0, %131 : i32
    %133 = arith.index_cast %132 : i32 to index
    %134 = memref.load %arg1[%133] : memref<16xi32, #tpu.memory_space<smem>>
    %c1_i32_63 = arith.constant 1 : i32
    %c0_i32_64 = arith.constant 0 : i32
    %135 = tpu.memref_slice %arg2[%134, %c0_i32_64] : memref<64x128xf32, #tpu.memory_space<any>> -> memref<1x128xf32, #tpu.memory_space<any>>
    %c0_i32_65 = arith.constant 0 : i32
    %136 = tpu.memref_slice %arg5[%131, %c0_i32_65] : memref<16x128xf32, #tpu.memory_space<vmem>> -> memref<1x128xf32, #tpu.memory_space<vmem>>
    %137 = tpu.memref_slice %arg6[%c1_i32_63] : memref<2x!tpu.dma_semaphore, #tpu.memory_space<semaphore_mem>> -> memref<1x!tpu.dma_semaphore, #tpu.memory_space<semaphore_mem>>
    %138 = tpu.memref_squeeze %137 : memref<1x!tpu.dma_semaphore, #tpu.memory_space<semaphore_mem>> -> memref<!tpu.dma_semaphore, #tpu.memory_space<semaphore_mem>>
    tpu.enqueue_dma source(%135 : memref<1x128xf32, #tpu.memory_space<any>>) target(%136 : memref<1x128xf32, #tpu.memory_space<vmem>>) target_semaphore(%138 : memref<!tpu.dma_semaphore, #tpu.memory_space<semaphore_mem>>)
    %c1_i32_66 = arith.constant 1 : i32
    %c0 = arith.constant 0 : index
    %c0_67 = arith.constant 0 : index
    %139 = vector.load %arg3[%c0, %c0_67] : memref<16x1xf32, #tpu.memory_space<vmem>>, vector<16x1xf32>
    %c0_i32_68 = arith.constant 0 : i32
    %c0_i32_69 = arith.constant 0 : i32
    %c0_i32_70 = arith.constant 0 : i32
    %140 = tpu.memref_slice %arg5[%c0_i32_69, %c0_i32_70] : memref<16x128xf32, #tpu.memory_space<vmem>> -> memref<8x128xf32, #tpu.memory_space<vmem>>
    %c0_i32_71 = arith.constant 0 : i32
    %c0_i32_72 = arith.constant 0 : i32
    %141 = tpu.memref_slice %arg5[%c0_i32_71, %c0_i32_72] : memref<16x128xf32, #tpu.memory_space<vmem>> -> memref<8x128xf32, #tpu.memory_space<vmem>>
    %142 = tpu.memref_slice %arg6[%c0_i32_68] : memref<2x!tpu.dma_semaphore, #tpu.memory_space<semaphore_mem>> -> memref<1x!tpu.dma_semaphore, #tpu.memory_space<semaphore_mem>>
    %143 = tpu.memref_squeeze %142 : memref<1x!tpu.dma_semaphore, #tpu.memory_space<semaphore_mem>> -> memref<!tpu.dma_semaphore, #tpu.memory_space<semaphore_mem>>
    tpu.wait_dma2 semaphore(%143 : memref<!tpu.dma_semaphore, #tpu.memory_space<semaphore_mem>>) src(%140 : memref<8x128xf32, #tpu.memory_space<vmem>>) dst(%141 : memref<8x128xf32, #tpu.memory_space<vmem>>)
    %c0_73 = arith.constant 0 : index
    %c0_74 = arith.constant 0 : index
    %144 = vector.load %arg5[%c0_73, %c0_74] : memref<16x128xf32, #tpu.memory_space<vmem>>, vector<8x128xf32>
    %145 = vector.extract_strided_slice %139 {offsets = [0, 0], sizes = [8, 1], strides = [1, 1]} : vector<16x1xf32> to vector<8x1xf32>
    %146 = vector.broadcast %145 : vector<8x1xf32> to vector<8x128xf32>
    %147 = arith.mulf %144, %146 : vector<8x128xf32>
    %c0_75 = arith.constant 0 : index
    %c0_76 = arith.constant 0 : index
    %148 = vector.load %arg4[%c0_75, %c0_76] : memref<16x128xf32, #tpu.memory_space<vmem>>, vector<8x128xf32>
    tpu.vector_store %arg4[%c0_75, %c0_76], %147 {strides = array<i32>} : memref<16x128xf32, #tpu.memory_space<vmem>>, vector<8x128xf32>,
    %c1_i32_77 = arith.constant 1 : i32
    %c8_i32_78 = arith.constant 8 : i32
    %c0_i32_79 = arith.constant 0 : i32
    %149 = tpu.memref_slice %arg5[%c8_i32_78, %c0_i32_79] : memref<16x128xf32, #tpu.memory_space<vmem>> -> memref<8x128xf32, #tpu.memory_space<vmem>>
    %c8_i32_80 = arith.constant 8 : i32
    %c0_i32_81 = arith.constant 0 : i32
    %150 = tpu.memref_slice %arg5[%c8_i32_80, %c0_i32_81] : memref<16x128xf32, #tpu.memory_space<vmem>> -> memref<8x128xf32, #tpu.memory_space<vmem>>
    %151 = tpu.memref_slice %arg6[%c1_i32_77] : memref<2x!tpu.dma_semaphore, #tpu.memory_space<semaphore_mem>> -> memref<1x!tpu.dma_semaphore, #tpu.memory_space<semaphore_mem>>
    %152 = tpu.memref_squeeze %151 : memref<1x!tpu.dma_semaphore, #tpu.memory_space<semaphore_mem>> -> memref<!tpu.dma_semaphore, #tpu.memory_space<semaphore_mem>>
    tpu.wait_dma2 semaphore(%152 : memref<!tpu.dma_semaphore, #tpu.memory_space<semaphore_mem>>) src(%149 : memref<8x128xf32, #tpu.memory_space<vmem>>) dst(%150 : memref<8x128xf32, #tpu.memory_space<vmem>>)
    %c8 = arith.constant 8 : index
    %c0_82 = arith.constant 0 : index
    %153 = vector.load %arg5[%c8, %c0_82] : memref<16x128xf32, #tpu.memory_space<vmem>>, vector<8x128xf32>
    %154 = vector.extract_strided_slice %139 {offsets = [8, 0], sizes = [8, 1], strides = [1, 1]} : vector<16x1xf32> to vector<8x1xf32>
    %155 = vector.broadcast %154 : vector<8x1xf32> to vector<8x128xf32>
    %156 = arith.mulf %153, %155 : vector<8x128xf32>
    %c8_83 = arith.constant 8 : index
    %c0_84 = arith.constant 0 : index
    %157 = vector.load %arg4[%c8_83, %c0_84] : memref<16x128xf32, #tpu.memory_space<vmem>>, vector<8x128xf32>
    tpu.vector_store %arg4[%c8_83, %c0_84], %156 {strides = array<i32>} : memref<16x128xf32, #tpu.memory_space<vmem>>, vector<8x128xf32>,
    return
  }
  func.func @transform_1(%arg0: i32, %arg1: memref<16xi32, #tpu.memory_space<smem>>) -> (i32, i32) {
    %c0_i32 = arith.constant 0 : i32
    %c0_i32_0 = arith.constant 0 : i32
    return %arg0, %c0_i32 : i32, i32
  }
  func.func @transform_2(%arg0: i32, %arg1: memref<16xi32, #tpu.memory_space<smem>>) -> (i32, i32) {
    %c0_i32 = arith.constant 0 : i32
    %c0_i32_0 = arith.constant 0 : i32
    return %arg0, %c0_i32 : i32, i32
  }
}

</mosaic_0001>

<bundles_post_ra>
// kernel: tpu_custom_call.1
= control target key start
LH: loop header
LB: loop body
LE: loop exit
PB: predicated region body
PF: predicated region fallthrough
CT: control target
= control target key end

     0   :  { %s1199_s0 = inlined_call_operand.vmem [shape: s32[16], index: 0, kind: input, shape index: {}]   ;;  %s1200_s1 = inlined_call_operand.hbm [shape: f32[64,128], index: 1, kind: input, shape index: {}]   ;;  %s1201_s2 = inlined_call_operand.vmem [shape: f32[16,1], index: 2, kind: input, shape index: {}]   ;;  %s1202_s3 = inlined_call_operand.hbm [shape: f32[16,128], index: 3, kind: output, shape index: {}]  }
   0x1   :  { %s8_s14 = sshll.u32 %s1199_s0, 4  ;;  %s9_s14 = int_to_ptr.vmem [resolvable:$true] %s8_s14 }
   0x2   :  { %s442_s15 = scalar_lea.vmem %s9_s14, 16  ;;  %p447_p1 = scmp.lt.s32.totalorder %s9_s14, %s9_s14 }
   0x3   :  { %p443_p0 = scmp.ne.s32.totalorder %s9_s14, %s442_s15  ;;  %p448_p2 = scmp.lt.s32.totalorder %s442_s15, %s442_s15 }
   0x5   :  { %p449_p3 = por %p448_p2, %p447_p1 }
   0x7   :  { %p450_p4 = pnand %p449_p3, %p443_p0 }
   0x9   :  { %453 = shalt.err (!%p450_p4)  }
   0xa   :  { %s868_s16 = smov [#allocation5]  }
   0xb   :  { %11 = dma.vmem_to_smem %s9_s14, 16, %s868_s16, [#allocation4] }
   0xc   :  { %860 = dma.done.wait [#allocation4], 16 }
   0xd   :  { %861 = vsyncadd [#allocation4], 4294967280 }
   0xe   :  { %13 = sfence }
   0xf   :  { %14 = vsyncpa [#allocation7], 0  ;;  %s19_s17 = sld [smem:[#allocation5]]  ;;  %v915_v0 = vld [vmem:[%s1201_s2] sm:$0xff]  ;;  %s869_s0 = smov [#allocation2]   ;;  %v922_v1 = vld [vmem:[%s1201_s2 + $0x8] sm:$0xff] }
  0x10   :  { %s29_s20 = sshll.u32 %s869_s0, 4  ;;  %s917_s21 = sld [smem:[#allocation5 + $0x1]]  ;;  %s924_s20 = int_to_ptr.vmem [resolvable:$true] %s29_s20 }
  0x11   :  { %s870_s24 = smov [#allocation2 + $0x1]   ;;  %s926_s26 = sld [smem:[#allocation5 + $0x2]] }
  0x12   :  { %s46_s25 = sshll.u32 %s870_s24, 4  ;;  %s871_s27 = smov [#allocation2 + $0x2]   ;;  %s928_s25 = int_to_ptr.vmem [resolvable:$true] %s46_s25 }
  0x13   :  { %s63_s28 = sshll.u32 %s871_s27, 4  ;;  %s930_s29 = sld [smem:[#allocation5 + $0x3]]  ;;  %s932_s28 = int_to_ptr.vmem [resolvable:$true] %s63_s28 }
  0x14   :  { %s941_s10 = scalar_lea.hbm %s1200_s1, 1024 }
  0x15   :  { %s386_s30 = sshll.u32 %s19_s17, 4 }
  0x16   :  { %s21_s2 = scalar_lea.hbm %s1200_s1, %s386_s30  ;;  %s388_s6 = sshll.u32 %s917_s21, 4 }
  0x17   :  { %s454_s7 = scalar_lea.hbm %s21_s2, 16  ;;  %p457_p6 = scmp.lt.u32.totalorder %s21_s2, %s1200_s1 }
  0x18   :  { %p455_p5 = scmp.ne.s32.totalorder %s21_s2, %s454_s7  ;;  %p458_p7 = scmp.lt.u32.totalorder %s941_s10, %s454_s7 }
  0x19   :  { %p460_p9 = scmp.lt.u32.totalorder %s454_s7, %s21_s2 }
  0x1a   :  { %p459_p8 = por %p458_p7, %p457_p6 }
  0x1c   :  { %p461_p10 = por %p460_p9, %p459_p8 }
  0x1e   :  { %p462_p11 = pnand %p461_p10, %p455_p5 }
  0x20   :  { %465 = shalt.err (!%p462_p11)  }
  0x21   :  { %s466_s13 = scalar_lea.vmem %s924_s20, 16  ;;  %s950_s14 = scalar_lea.vmem %s924_s20, 256 }
  0x22   :  { %p467_p12 = scmp.ne.s32.totalorder %s924_s20, %s466_s13  ;;  %p471_p13 = scmp.lt.s32.totalorder %s924_s20, %s924_s20 }
  0x23   :  { %p472_p0 = scmp.lt.s32.totalorder %s950_s14, %s466_s13 }
  0x25   :  { %p473_p1 = por %p472_p0, %p471_p13 }
  0x27   :  { %p474_p2 = pnand %p473_p1, %p467_p12 }
  0x29   :  { %477 = shalt.err (!%p474_p2)  }
  0x2a   :  { %32 = dma.hbm_to_vmem [thread:$0]  %s21_s2, 16, %s924_s20, [#allocation3] }
  0x2b   :  { %s37_s17 = scalar_lea.hbm %s1200_s1, %s388_s6  ;;  %s390_s18 = sshll.u32 %s926_s26, 4 }
  0x2c   :  { %s478_s19 = scalar_lea.hbm %s37_s17, 16  ;;  %p481_p4 = scmp.lt.u32.totalorder %s37_s17, %s1200_s1 }
  0x2d   :  { %p479_p3 = scmp.ne.s32.totalorder %s37_s17, %s478_s19  ;;  %p482_p5 = scmp.lt.u32.totalorder %s941_s10, %s478_s19 }
  0x2e   :  { %p484_p7 = scmp.lt.u32.totalorder %s478_s19, %s37_s17 }
  0x2f   :  { %p483_p6 = por %p482_p5, %p481_p4 }
  0x31   :  { %p485_p8 = por %p484_p7, %p483_p6 }
  0x33   :  { %p486_p9 = pnand %p485_p8, %p479_p3 }
  0x35   :  { %489 = shalt.err (!%p486_p9)  }
  0x36   :  { %s490_s22 = scalar_lea.vmem %s928_s25, 16  ;;  %p495_p11 = scmp.lt.s32.totalorder %s928_s25, %s924_s20 }
  0x37   :  { %p491_p10 = scmp.ne.s32.totalorder %s928_s25, %s490_s22  ;;  %p496_p12 = scmp.lt.s32.totalorder %s950_s14, %s490_s22 }
  0x39   :  { %p497_p13 = por %p496_p12, %p495_p11 }
  0x3b   :  { %p498_p0 = pnand %p497_p13, %p491_p10 }
  0x3d   :  { %501 = shalt.err (!%p498_p0)  }
  0x3e   :  { %49 = dma.hbm_to_vmem [thread:$0]  %s37_s17, 16, %s928_s25, [#allocation3] }
  0x3f   :  { %s54_s26 = scalar_lea.hbm %s1200_s1, %s390_s18  ;;  %s392_s27 = sshll.u32 %s930_s29, 4 }
  0x40   :  { %s502_s30 = scalar_lea.hbm %s54_s26, 16  ;;  %p505_p2 = scmp.lt.u32.totalorder %s54_s26, %s1200_s1 }
  0x41   :  { %p503_p1 = scmp.ne.s32.totalorder %s54_s26, %s502_s30  ;;  %p506_p3 = scmp.lt.u32.totalorder %s941_s10, %s502_s30 }
  0x42   :  { %p508_p5 = scmp.lt.u32.totalorder %s502_s30, %s54_s26 }
  0x43   :  { %p507_p4 = por %p506_p3, %p505_p2 }
  0x45   :  { %p509_p6 = por %p508_p5, %p507_p4 }
  0x47   :  { %p510_p7 = pnand %p509_p6, %p503_p1 }
  0x49   :  { %513 = shalt.err (!%p510_p7)  }
  0x4a   :  { %s514_s25 = scalar_lea.vmem %s932_s28, 16  ;;  %p519_p9 = scmp.lt.s32.totalorder %s932_s28, %s924_s20 }
  0x4b   :  { %p515_p8 = scmp.ne.s32.totalorder %s932_s28, %s514_s25  ;;  %p520_p10 = scmp.lt.s32.totalorder %s950_s14, %s514_s25 }
  0x4d   :  { %p521_p11 = por %p520_p10, %p519_p9 }
  0x4f   :  { %p522_p12 = pnand %p521_p11, %p515_p8 }
  0x51   :  { %525 = shalt.err (!%p522_p12)  }
  0x52   :  { %66 = dma.hbm_to_vmem [thread:$0]  %s54_s26, 16, %s932_s28, [#allocation3] }
  0x53   :  { %s71_s6 = scalar_lea.hbm %s1200_s1, %s392_s27  ;;  %s872_s7 = smov [#allocation2 + $0x3]  }
  0x54   :  { %s80_s8 = sshll.u32 %s872_s7, 4  ;;  %s987_s9 = sld [smem:[#allocation5 + $0x4]]  ;;  %s81_s8 = int_to_ptr.vmem [resolvable:$true] %s80_s8 }
  0x55   :  { %s526_s11 = scalar_lea.hbm %s71_s6, 16  ;;  %p529_p0 = scmp.lt.u32.totalorder %s71_s6, %s1200_s1 }
  0x56   :  { %p527_p13 = scmp.ne.s32.totalorder %s71_s6, %s526_s11  ;;  %p530_p1 = scmp.lt.u32.totalorder %s941_s10, %s526_s11 }
  0x57   :  { %p532_p3 = scmp.lt.u32.totalorder %s526_s11, %s71_s6 }
  0x58   :  { %p531_p2 = por %p530_p1, %p529_p0 }
  0x5a   :  { %p533_p4 = por %p532_p3, %p531_p2 }
  0x5c   :  { %p534_p5 = pnand %p533_p4, %p527_p13 }
  0x5e   :  { %537 = shalt.err (!%p534_p5)  }
  0x5f   :  { %s538_s28 = scalar_lea.vmem %s81_s8, 16  ;;  %p543_p7 = scmp.lt.s32.totalorder %s81_s8, %s924_s20 }
  0x60   :  { %p539_p6 = scmp.ne.s32.totalorder %s81_s8, %s538_s28  ;;  %p544_p8 = scmp.lt.s32.totalorder %s950_s14, %s538_s28 }
  0x62   :  { %p545_p9 = por %p544_p8, %p543_p7 }
  0x64   :  { %p546_p10 = pnand %p545_p9, %p539_p6 }
  0x66   :  { %549 = shalt.err (!%p546_p10)  }
  0x67   :  { %83 = dma.hbm_to_vmem [thread:$0]  %s71_s6, 16, %s81_s8, [#allocation3] }
  0x68   :  { %s873_s15 = smov [#allocation2 + $0x4]   ;;  %s995_s17 = sld [smem:[#allocation5 + $0x5]] }
  0x69   :  { %s97_s16 = sshll.u32 %s873_s15, 4  ;;  %s874_s18 = smov [#allocation2 + $0x5]   ;;  %s98_s16 = int_to_ptr.vmem [resolvable:$true] %s97_s16 }
  0x6a   :  { %s114_s19 = sshll.u32 %s874_s18, 4  ;;  %s997_s0 = sld [smem:[#allocation5 + $0x6]]  ;;  %s1000_s19 = int_to_ptr.vmem [resolvable:$true] %s114_s19 }
  0x6b   :  { %s394_s21 = sshll.u32 %s987_s9, 4 }
  0x6c   :  { %s88_s24 = scalar_lea.hbm %s1200_s1, %s394_s21 }
  0x6d   :  { %s550_s26 = scalar_lea.hbm %s88_s24, 16  ;;  %p553_p12 = scmp.lt.u32.totalorder %s88_s24, %s1200_s1 }
  0x6e   :  { %p551_p11 = scmp.ne.s32.totalorder %s88_s24, %s550_s26  ;;  %p554_p13 = scmp.lt.u32.totalorder %s941_s10, %s550_s26 }
  0x6f   :  { %p556_p1 = scmp.lt.u32.totalorder %s550_s26, %s88_s24 }
  0x70   :  { %p555_p0 = por %p554_p13, %p553_p12 }
  0x72   :  { %p557_p2 = por %p556_p1, %p555_p0 }
  0x74   :  { %p558_p3 = pnand %p557_p2, %p551_p11 }
  0x76   :  { %561 = shalt.err (!%p558_p3)  }
  0x77   :  { %s562_s4 = scalar_lea.vmem %s98_s16, 16  ;;  %p567_p5 = scmp.lt.s32.totalorder %s98_s16, %s924_s20 }
  0x78   :  { %p563_p4 = scmp.ne.s32.totalorder %s98_s16, %s562_s4  ;;  %p568_p6 = scmp.lt.s32.totalorder %s950_s14, %s562_s4 }
  0x7a   :  { %p569_p7 = por %p568_p6, %p567_p5 }
  0x7c   :  { %p570_p8 = pnand %p569_p7, %p563_p4 }
  0x7e   :  { %573 = shalt.err (!%p570_p8)  }
  0x7f   :  { %100 = dma.hbm_to_vmem [thread:$0]  %s88_s24, 16, %s98_s16, [#allocation3] }
  0x80   :  { %s396_s5 = sshll.u32 %s995_s17, 4  ;;  %s875_s25 = smov [#allocation2 + $0x6]  }
  0x81   :  { %s131_s29 = sshll.u32 %s875_s25, 4  ;;  %s105_s7 = scalar_lea.hbm %s1200_s1, %s396_s5  ;;  %s1015_s29 = int_to_ptr.vmem [resolvable:$true] %s131_s29 }
  0x82   :  { %s574_s8 = scalar_lea.hbm %s105_s7, 16  ;;  %p577_p10 = scmp.lt.u32.totalorder %s105_s7, %s1200_s1 }
  0x83   :  { %p575_p9 = scmp.ne.s32.totalorder %s105_s7, %s574_s8  ;;  %p578_p11 = scmp.lt.u32.totalorder %s941_s10, %s574_s8 }
  0x84   :  { %p580_p13 = scmp.lt.u32.totalorder %s574_s8, %s105_s7 }
  0x85   :  { %p579_p12 = por %p578_p11, %p577_p10 }
  0x87   :  { %p581_p0 = por %p580_p13, %p579_p12 }
  0x89   :  { %p582_p1 = pnand %p581_p0, %p575_p9 }
  0x8b   :  { %585 = shalt.err (!%p582_p1)  }
  0x8c   :  { %s586_s12 = scalar_lea.vmem %s1000_s19, 16  ;;  %p591_p3 = scmp.lt.s32.totalorder %s1000_s19, %s924_s20 }
  0x8d   :  { %p587_p2 = scmp.ne.s32.totalorder %s1000_s19, %s586_s12  ;;  %p592_p4 = scmp.lt.s32.totalorder %s950_s14, %s586_s12 }
  0x8f   :  { %p593_p5 = por %p592_p4, %p591_p3 }
  0x91   :  { %p594_p6 = pnand %p593_p5, %p587_p2 }
  0x93   :  { %597 = shalt.err (!%p594_p6)  }
  0x94   :  { %117 = dma.hbm_to_vmem [thread:$0]  %s105_s7, 16, %s1000_s19, [#allocation3] }
  0x95   :  { %s398_s13 = sshll.u32 %s997_s0, 4  ;;  %s1028_s28 = sld [smem:[#allocation5 + $0x7]] }
  0x96   :  { %s122_s17 = scalar_lea.hbm %s1200_s1, %s398_s13 }
  0x97   :  { %s598_s18 = scalar_lea.hbm %s122_s17, 16  ;;  %p601_p8 = scmp.lt.u32.totalorder %s122_s17, %s1200_s1 }
  0x98   :  { %p599_p7 = scmp.ne.s32.totalorder %s122_s17, %s598_s18  ;;  %p602_p9 = scmp.lt.u32.totalorder %s941_s10, %s598_s18 }
  0x99   :  { %p604_p11 = scmp.lt.u32.totalorder %s598_s18, %s122_s17 }
  0x9a   :  { %p603_p10 = por %p602_p9, %p601_p8 }
  0x9c   :  { %p605_p12 = por %p604_p11, %p603_p10 }
  0x9e   :  { %p606_p13 = pnand %p605_p12, %p599_p7 }
  0xa0   :  { %609 = shalt.err (!%p606_p13)  }
  0xa1   :  { %s610_s19 = scalar_lea.vmem %s1015_s29, 16  ;;  %p615_p1 = scmp.lt.s32.totalorder %s1015_s29, %s924_s20 }
  0xa2   :  { %p611_p0 = scmp.ne.s32.totalorder %s1015_s29, %s610_s19  ;;  %p616_p2 = scmp.lt.s32.totalorder %s950_s14, %s610_s19 }
  0xa4   :  { %p617_p3 = por %p616_p2, %p615_p1 }
  0xa6   :  { %p618_p4 = pnand %p617_p3, %p611_p0 }
  0xa8   :  { %621 = shalt.err (!%p618_p4)  }
  0xa9   :  { %134 = dma.hbm_to_vmem [thread:$0]  %s122_s17, 16, %s1015_s29, [#allocation3] }
  0xaa   :  { %s876_s0 = smov [#allocation2 + $0x7]   ;;  %s1043_s24 = sld [smem:[#allocation5 + $0x8]] }
  0xab   :  { %s148_s23 = sshll.u32 %s876_s0, 4  ;;  %s877_s26 = smov [#allocation2 + $0x8]   ;;  %s149_s23 = int_to_ptr.vmem [resolvable:$true] %s148_s23 }
  0xac   :  { %s165_s27 = sshll.u32 %s877_s26, 4  ;;  %s1045_s30 = sld [smem:[#allocation5 + $0x9]]  ;;  %s1048_s27 = int_to_ptr.vmem [resolvable:$true] %s165_s27 }
  0xad   :  { %s400_s4 = sshll.u32 %s1028_s28, 4 }
  0xae   :  { %s139_s2 = scalar_lea.hbm %s1200_s1, %s400_s4 }
  0xaf   :  { %s622_s6 = scalar_lea.hbm %s139_s2, 16  ;;  %p625_p6 = scmp.lt.u32.totalorder %s139_s2, %s1200_s1 }
  0xb0   :  { %p623_p5 = scmp.ne.s32.totalorder %s139_s2, %s622_s6  ;;  %p626_p7 = scmp.lt.u32.totalorder %s941_s10, %s622_s6 }
  0xb1   :  { %p628_p9 = scmp.lt.u32.totalorder %s622_s6, %s139_s2 }
  0xb2   :  { %p627_p8 = por %p626_p7, %p625_p6 }
  0xb4   :  { %p629_p10 = por %p628_p9, %p627_p8 }
  0xb6   :  { %p630_p11 = pnand %p629_p10, %p623_p5 }
  0xb8   :  { %633 = shalt.err (!%p630_p11)  }
  0xb9   :  { %s634_s8 = scalar_lea.vmem %s149_s23, 16  ;;  %p639_p13 = scmp.lt.s32.totalorder %s149_s23, %s924_s20 }
  0xba   :  { %p635_p12 = scmp.ne.s32.totalorder %s149_s23, %s634_s8  ;;  %p640_p0 = scmp.lt.s32.totalorder %s950_s14, %s634_s8 }
  0xbc   :  { %p641_p1 = por %p640_p0, %p639_p13 }
  0xbe   :  { %p642_p2 = pnand %p641_p1, %p635_p12 }
  0xc0   :  { %645 = shalt.err (!%p642_p2)  }
  0xc1   :  { %151 = dma.hbm_to_vmem [thread:$0]  %s139_s2, 16, %s149_s23, [#allocation3] }
  0xc2   :  { %s402_s9 = sshll.u32 %s1043_s24, 4  ;;  %s878_s11 = smov [#allocation2 + $0x9]  }
  0xc3   :  { %s182_s12 = sshll.u32 %s878_s11, 4  ;;  %s155_s15 = scalar_lea.hbm %s1200_s1, %s402_s9  ;;  %s1063_s12 = int_to_ptr.vmem [resolvable:$true] %s182_s12 }
  0xc4   :  { %s646_s16 = scalar_lea.hbm %s155_s15, 16  ;;  %p649_p4 = scmp.lt.u32.totalorder %s155_s15, %s1200_s1 }
  0xc5   :  { %p647_p3 = scmp.ne.s32.totalorder %s155_s15, %s646_s16  ;;  %p650_p5 = scmp.lt.u32.totalorder %s941_s10, %s646_s16 }
  0xc6   :  { %p652_p7 = scmp.lt.u32.totalorder %s646_s16, %s155_s15 }
  0xc7   :  { %p651_p6 = por %p650_p5, %p649_p4 }
  0xc9   :  { %p653_p8 = por %p652_p7, %p651_p6 }
  0xcb   :  { %p654_p9 = pnand %p653_p8, %p647_p3 }
  0xcd   :  { %657 = shalt.err (!%p654_p9)  }
  0xce   :  { %s658_s21 = scalar_lea.vmem %s1048_s27, 16  ;;  %p663_p11 = scmp.lt.s32.totalorder %s1048_s27, %s924_s20 }
  0xcf   :  { %p659_p10 = scmp.ne.s32.totalorder %s1048_s27, %s658_s21  ;;  %p664_p12 = scmp.lt.s32.totalorder %s950_s14, %s658_s21 }
  0xd1   :  { %p665_p13 = por %p664_p12, %p663_p11 }
  0xd3   :  { %p666_p0 = pnand %p665_p13, %p659_p10 }
  0xd5   :  { %669 = shalt.err (!%p666_p0)  }
  0xd6   :  { %168 = dma.hbm_to_vmem [thread:$0]  %s155_s15, 16, %s1048_s27, [#allocation3 + $0x1] }
  0xd7   :  { %s404_s22 = sshll.u32 %s1045_s30, 4  ;;  %s1076_s19 = sld [smem:[#allocation5 + $0xa]] }
  0xd8   :  { %s173_s24 = scalar_lea.hbm %s1200_s1, %s404_s22 }
  0xd9   :  { %s670_s26 = scalar_lea.hbm %s173_s24, 16  ;;  %p673_p2 = scmp.lt.u32.totalorder %s173_s24, %s1200_s1 }
  0xda   :  { %p671_p1 = scmp.ne.s32.totalorder %s173_s24, %s670_s26  ;;  %p674_p3 = scmp.lt.u32.totalorder %s941_s10, %s670_s26 }
  0xdb   :  { %p676_p5 = scmp.lt.u32.totalorder %s670_s26, %s173_s24 }
  0xdc   :  { %p675_p4 = por %p674_p3, %p673_p2 }
  0xde   :  { %p677_p6 = por %p676_p5, %p675_p4 }
  0xe0   :  { %p678_p7 = pnand %p677_p6, %p671_p1 }
  0xe2   :  { %681 = shalt.err (!%p678_p7)  }
  0xe3   :  { %s682_s27 = scalar_lea.vmem %s1063_s12, 16  ;;  %p687_p9 = scmp.lt.s32.totalorder %s1063_s12, %s924_s20 }
  0xe4   :  { %p683_p8 = scmp.ne.s32.totalorder %s1063_s12, %s682_s27  ;;  %p688_p10 = scmp.lt.s32.totalorder %s950_s14, %s682_s27 }
  0xe6   :  { %p689_p11 = por %p688_p10, %p687_p9 }
  0xe8   :  { %p690_p12 = pnand %p689_p11, %p683_p8 }
  0xea   :  { %693 = shalt.err (!%p690_p12)  }
  0xeb   :  { %185 = dma.hbm_to_vmem [thread:$0]  %s173_s24, 16, %s1063_s12, [#allocation3 + $0x1] }
  0xec   :  { %s879_s30 = smov [#allocation2 + $0xa]   ;;  %s1091_s2 = sld [smem:[#allocation5 + $0xb]] }
  0xed   :  { %s199_s25 = sshll.u32 %s879_s30, 4  ;;  %s880_s6 = smov [#allocation2 + $0xb]   ;;  %s200_s25 = int_to_ptr.vmem [resolvable:$true] %s199_s25 }
  0xee   :  { %s216_s7 = sshll.u32 %s880_s6, 4  ;;  %s1093_s29 = sld [smem:[#allocation5 + $0xc]]  ;;  %s1096_s7 = int_to_ptr.vmem [resolvable:$true] %s216_s7 }
  0xef   :  { %s406_s8 = sshll.u32 %s1076_s19, 4 }
  0xf0   :  { %s190_s13 = scalar_lea.hbm %s1200_s1, %s406_s8 }
  0xf1   :  { %s694_s28 = scalar_lea.hbm %s190_s13, 16  ;;  %p697_p0 = scmp.lt.u32.totalorder %s190_s13, %s1200_s1 }
  0xf2   :  { %p695_p13 = scmp.ne.s32.totalorder %s190_s13, %s694_s28  ;;  %p698_p1 = scmp.lt.u32.totalorder %s941_s10, %s694_s28 }
  0xf3   :  { %p700_p3 = scmp.lt.u32.totalorder %s694_s28, %s190_s13 }
  0xf4   :  { %p699_p2 = por %p698_p1, %p697_p0 }
  0xf6   :  { %p701_p4 = por %p700_p3, %p699_p2 }
  0xf8   :  { %p702_p5 = pnand %p701_p4, %p695_p13 }
  0xfa   :  { %705 = shalt.err (!%p702_p5)  }
  0xfb   :  { %s706_s16 = scalar_lea.vmem %s200_s25, 16  ;;  %p711_p7 = scmp.lt.s32.totalorder %s200_s25, %s924_s20 }
  0xfc   :  { %p707_p6 = scmp.ne.s32.totalorder %s200_s25, %s706_s16  ;;  %p712_p8 = scmp.lt.s32.totalorder %s950_s14, %s706_s16 }
  0xfe   :  { %p713_p9 = por %p712_p8, %p711_p7 }
 0x100   :  { %p714_p10 = pnand %p713_p9, %p707_p6 }
 0x102   :  { %717 = shalt.err (!%p714_p10)  }
 0x103   :  { %202 = dma.hbm_to_vmem [thread:$0]  %s190_s13, 16, %s200_s25, [#allocation3 + $0x1] }
 0x104   :  { %s408_s17 = sshll.u32 %s1091_s2, 4  ;;  %s881_s18 = smov [#allocation2 + $0xc]  }
 0x105   :  { %s233_s21 = sshll.u32 %s881_s18, 4  ;;  %s207_s0 = scalar_lea.hbm %s1200_s1, %s408_s17  ;;  %s1111_s21 = int_to_ptr.vmem [resolvable:$true] %s233_s21 }
 0x106   :  { %s718_s23 = scalar_lea.hbm %s207_s0, 16  ;;  %p721_p12 = scmp.lt.u32.totalorder %s207_s0, %s1200_s1 }
 0x107   :  { %p719_p11 = scmp.ne.s32.totalorder %s207_s0, %s718_s23  ;;  %p722_p13 = scmp.lt.u32.totalorder %s941_s10, %s718_s23 }
 0x108   :  { %p724_p1 = scmp.lt.u32.totalorder %s718_s23, %s207_s0 }
 0x109   :  { %p723_p0 = por %p722_p13, %p721_p12 }
 0x10b   :  { %p725_p2 = por %p724_p1, %p723_p0 }
 0x10d   :  { %p726_p3 = pnand %p725_p2, %p719_p11 }
 0x10f   :  { %729 = shalt.err (!%p726_p3)  }
 0x110   :  { %s730_s4 = scalar_lea.vmem %s1096_s7, 16  ;;  %p735_p5 = scmp.lt.s32.totalorder %s1096_s7, %s924_s20 }
 0x111   :  { %p731_p4 = scmp.ne.s32.totalorder %s1096_s7, %s730_s4  ;;  %p736_p6 = scmp.lt.s32.totalorder %s950_s14, %s730_s4 }
 0x113   :  { %p737_p7 = por %p736_p6, %p735_p5 }
 0x115   :  { %p738_p8 = pnand %p737_p7, %p731_p4 }
 0x117   :  { %741 = shalt.err (!%p738_p8)  }
 0x118   :  { %219 = dma.hbm_to_vmem [thread:$0]  %s207_s0, 16, %s1096_s7, [#allocation3 + $0x1] }
 0x119   :  { %s410_s5 = sshll.u32 %s1093_s29, 4  ;;  %s1124_s27 = sld [smem:[#allocation5 + $0xd]] }
 0x11a   :  { %s224_s2 = scalar_lea.hbm %s1200_s1, %s410_s5 }
 0x11b   :  { %s742_s6 = scalar_lea.hbm %s224_s2, 16  ;;  %p745_p10 = scmp.lt.u32.totalorder %s224_s2, %s1200_s1 }
 0x11c   :  { %p743_p9 = scmp.ne.s32.totalorder %s224_s2, %s742_s6  ;;  %p746_p11 = scmp.lt.u32.totalorder %s941_s10, %s742_s6 }
 0x11d   :  { %p748_p13 = scmp.lt.u32.totalorder %s742_s6, %s224_s2 }
 0x11e   :  { %p747_p12 = por %p746_p11, %p745_p10 }
 0x120   :  { %p749_p0 = por %p748_p13, %p747_p12 }
 0x122   :  { %p750_p1 = pnand %p749_p0, %p743_p9 }
 0x124   :  { %753 = shalt.err (!%p750_p1)  }
 0x125   :  { %s754_s7 = scalar_lea.vmem %s1111_s21, 16  ;;  %p759_p3 = scmp.lt.s32.totalorder %s1111_s21, %s924_s20 }
 0x126   :  { %p755_p2 = scmp.ne.s32.totalorder %s1111_s21, %s754_s7  ;;  %p760_p4 = scmp.lt.s32.totalorder %s950_s14, %s754_s7 }
 0x128   :  { %p761_p5 = por %p760_p4, %p759_p3 }
 0x12a   :  { %p762_p6 = pnand %p761_p5, %p755_p2 }
 0x12c   :  { %765 = shalt.err (!%p762_p6)  }
 0x12d   :  { %236 = dma.hbm_to_vmem [thread:$0]  %s224_s2, 16, %s1111_s21, [#allocation3 + $0x1] }
 0x12e   :  { %s882_s29 = smov [#allocation2 + $0xd]   ;;  %s1139_s13 = sld [smem:[#allocation5 + $0xe]] }
 0x12f   :  { %s250_s11 = sshll.u32 %s882_s29, 4  ;;  %s883_s28 = smov [#allocation2 + $0xe]   ;;  %s251_s11 = int_to_ptr.vmem [resolvable:$true] %s250_s11 }
 0x130   :  { %s267_s15 = sshll.u32 %s883_s28, 4  ;;  %s1141_s12 = sld [smem:[#allocation5 + $0xf]]  ;;  %s1144_s15 = int_to_ptr.vmem [resolvable:$true] %s267_s15 }
 0x131   :  { %s412_s16 = sshll.u32 %s1124_s27, 4 }
 0x132   :  { %s241_s22 = scalar_lea.hbm %s1200_s1, %s412_s16 }
 0x133   :  { %s766_s19 = scalar_lea.hbm %s241_s22, 16  ;;  %p769_p8 = scmp.lt.u32.totalorder %s241_s22, %s1200_s1 }
 0x134   :  { %p767_p7 = scmp.ne.s32.totalorder %s241_s22, %s766_s19  ;;  %p770_p9 = scmp.lt.u32.totalorder %s941_s10, %s766_s19 }
 0x135   :  { %p772_p11 = scmp.lt.u32.totalorder %s766_s19, %s241_s22 }
 0x136   :  { %p771_p10 = por %p770_p9, %p769_p8 }
 0x138   :  { %p773_p12 = por %p772_p11, %p771_p10 }
 0x13a   :  { %p774_p13 = pnand %p773_p12, %p767_p7 }
 0x13c   :  { %777 = shalt.err (!%p774_p13)  }
 0x13d   :  { %s778_s23 = scalar_lea.vmem %s251_s11, 16  ;;  %p783_p1 = scmp.lt.s32.totalorder %s251_s11, %s924_s20 }
 0x13e   :  { %p779_p0 = scmp.ne.s32.totalorder %s251_s11, %s778_s23  ;;  %p784_p2 = scmp.lt.s32.totalorder %s950_s14, %s778_s23 }
 0x140   :  { %p785_p3 = por %p784_p2, %p783_p1 }
 0x142   :  { %p786_p4 = pnand %p785_p3, %p779_p0 }
 0x144   :  { %789 = shalt.err (!%p786_p4)  }
 0x145   :  { %253 = dma.hbm_to_vmem [thread:$0]  %s241_s22, 16, %s251_s11, [#allocation3 + $0x1] }
 0x146   :  { %s414_s24 = sshll.u32 %s1139_s13, 4  ;;  %s884_s26 = smov [#allocation2 + $0xf]  }
 0x147   :  { %s284_s4 = sshll.u32 %s884_s26, 4  ;;  %s258_s30 = scalar_lea.hbm %s1200_s1, %s414_s24  ;;  %s1159_s4 = int_to_ptr.vmem [resolvable:$true] %s284_s4 }
 0x148   :  { %s790_s25 = scalar_lea.hbm %s258_s30, 16  ;;  %p793_p6 = scmp.lt.u32.totalorder %s258_s30, %s1200_s1 }
 0x149   :  { %p791_p5 = scmp.ne.s32.totalorder %s258_s30, %s790_s25  ;;  %p794_p7 = scmp.lt.u32.totalorder %s941_s10, %s790_s25 }
 0x14a   :  { %p796_p9 = scmp.lt.u32.totalorder %s790_s25, %s258_s30 }
 0x14b   :  { %p795_p8 = por %p794_p7, %p793_p6 }
 0x14d   :  { %p797_p10 = por %p796_p9, %p795_p8 }
 0x14f   :  { %p798_p11 = pnand %p797_p10, %p791_p5 }
 0x151   :  { %801 = shalt.err (!%p798_p11)  }
 0x152   :  { %s802_s8 = scalar_lea.vmem %s1144_s15, 16  ;;  %p807_p13 = scmp.lt.s32.totalorder %s1144_s15, %s924_s20 }
 0x153   :  { %p803_p12 = scmp.ne.s32.totalorder %s1144_s15, %s802_s8  ;;  %p808_p0 = scmp.lt.s32.totalorder %s950_s14, %s802_s8 }
 0x155   :  { %p809_p1 = por %p808_p0, %p807_p13 }
 0x157   :  { %p810_p2 = pnand %p809_p1, %p803_p12 }
 0x159   :  { %813 = shalt.err (!%p810_p2)  }
 0x15a   :  { %270 = dma.hbm_to_vmem [thread:$0]  %s258_s30, 16, %s1144_s15, [#allocation3 + $0x1] }
 0x15b   :  { %s416_s9 = sshll.u32 %s1141_s12, 4 }
 0x15c   :  { %s275_s11 = scalar_lea.hbm %s1200_s1, %s416_s9 }
 0x15d   :  { %s814_s13 = scalar_lea.hbm %s275_s11, 16  ;;  %p817_p4 = scmp.lt.u32.totalorder %s275_s11, %s1200_s1 }
 0x15e   :  { %p815_p3 = scmp.ne.s32.totalorder %s275_s11, %s814_s13  ;;  %p818_p5 = scmp.lt.u32.totalorder %s941_s10, %s814_s13 }
 0x15f   :  { %p820_p7 = scmp.lt.u32.totalorder %s814_s13, %s275_s11 }
 0x160   :  { %p819_p6 = por %p818_p5, %p817_p4 }
 0x162   :  { %p821_p8 = por %p820_p7, %p819_p6 }
 0x164   :  { %p822_p9 = pnand %p821_p8, %p815_p3 }
 0x166   :  { %825 = shalt.err (!%p822_p9)  }
 0x167   :  { %s826_s15 = scalar_lea.vmem %s1159_s4, 16  ;;  %p831_p11 = scmp.lt.s32.totalorder %s1159_s4, %s924_s20 }
 0x168   :  { %p827_p10 = scmp.ne.s32.totalorder %s1159_s4, %s826_s15  ;;  %p832_p12 = scmp.lt.s32.totalorder %s950_s14, %s826_s15 }
 0x16a   :  { %p833_p13 = por %p832_p12, %p831_p11 }
 0x16c   :  { %p834_p0 = pnand %p833_p13, %p827_p10 }
 0x16e   :  { %837 = shalt.err (!%p834_p0)  }
 0x16f   :  { %287 = dma.hbm_to_vmem [thread:$0]  %s275_s11, 16, %s1159_s4, [#allocation3 + $0x1] }
 0x170   :  { %862 = dma.done.wait [#allocation3], 128 }
 0x171   :  { %863 = vsyncadd [#allocation3], 4294967168  ;;  %v885_v2 = vmov 0   ;;  %v293_v3 = vld [vmem:[#allocation2] sm:$0xff] }
 0x172   :  { %440 = vset.pattern.permute.xlu0 %v885_v2 }
 0x173   :  { %296 = vperm.xlu0 %440, %v915_v0  }
 0x177   :  { %441 = vset.pattern.permute.xlu0 %v885_v2 }
 0x1f2   :  { %v297_v4 = vpop.permute.xlu0 %296 }
 0x1f3   :  { %v299_v5 = vmul.f32 %v297_v4, %v293_v3 }
 0x1f5   :  { %300 = vst [vmem:[#allocation6] sm:$0xff] %v299_v5 }
 0x1f6   :  { %864 = dma.done.wait [#allocation3 + $0x1], 128 }
 0x1f7   :  { %865 = vsyncadd [#allocation3 + $0x1], 4294967168  ;;  %306 = vperm.xlu0 %441, %v922_v1   ;;  %s886_s1 = smov [#allocation6]   ;;  %v303_v6 = vld [vmem:[#allocation2 + $0x8] sm:$0xff] }
 0x1f8   :  { %s316_s20 = sshll.u32 %s886_s1, 4  ;;  %s317_s20 = int_to_ptr.vmem [resolvable:$true] %s316_s20 }
 0x1f9   :  { %s838_s10 = scalar_lea.vmem %s317_s20, 256  ;;  %p843_p2 = scmp.lt.s32.totalorder %s317_s20, %s317_s20 }
 0x1fa   :  { %p839_p1 = scmp.ne.s32.totalorder %s317_s20, %s838_s10  ;;  %p844_p3 = scmp.lt.s32.totalorder %s838_s10, %s838_s10 }
 0x1fc   :  { %p845_p4 = por %p844_p3, %p843_p2 }
 0x1fe   :  { %p846_p5 = pnand %p845_p4, %p839_p1 }
 0x276   :  { %v307_v7 = vpop.permute.xlu0 %306 }
 0x277   :  { %v309_v8 = vmul.f32 %v307_v7, %v303_v6 }
 0x279   :  { %310 = vst [vmem:[#allocation6 + $0x8] sm:$0xff] %v309_v8 }
 0x27a   :  { %849 = shalt.err (!%p846_p5)
}
 0x27b   :  { %s850_s17 = scalar_lea.hbm %s1202_s3, 256 }
 0x27c   :  { %p851_p6 = scmp.ne.s32.totalorder %s1202_s3, %s850_s17  ;;  %p854_p7 = scmp.lt.u32.totalorder %s850_s17, %s1202_s3 }
 0x27e   :  { %p856_p8 = pnand %p854_p7, %p851_p6 }
 0x280   :  { %859 = shalt.err (!%p856_p8)
}
 0x281   :  { %s887_s21 = smov 128   ;;  %s888_s23 = smov 8  }
 0x282   :  { %322 = dma.vmem_to_hbm [thread:$0]  %s317_s20, 256, %s1202_s3, [#allocation7], %s887_s21, %s887_s21, %s888_s23  }
 0x283   :  { %866 = dma.done.wait [#allocation7], 256  }
 0x284   :  { %867 = vsyncadd [#allocation7], 4294967040 }
 0x285   :  { %326 = vsyncpa [#allocation7], 1 }
 0x286   :  { %327 = vsyncmov [#allocation3] }
 0x289   :  { %s328_s4 = vpop.sfrf %327 }
 0x28a   :  { %p417_p9 = scmp.ne.s32.totalorder %s328_s4, 0 }
 0x28c   :  { %332 = shalt.err (%p417_p9)  }
 0x28d   :  { %334 = vsyncmov [#allocation3 + $0x1] }
 0x290   :  { %s335_s5 = vpop.sfrf %334 }
 0x291   :  { %p418_p10 = scmp.ne.s32.totalorder %s335_s5, 0 }
 0x293   :  { %339 = shalt.err (%p418_p10)  }

</bundles_post_ra>
